<compile_context>
chip_gen: v6e
topology: v6e:2x2x1
jax: 0.10.0
libtpu: 0.0.40
codegen_flags: <defaults>
</compile_context>

<pallas_src>
import jax
import jax.numpy as jnp
from jax.experimental import pallas as pl
from jax.experimental.pallas import tpu as pltpu

_VMEM_LIMIT = 64 * 1024 * 1024


def _row_tile(h, max_rows):
    """Largest divisor of h that is <= max_rows (>= 1)."""
    t = max(1, min(h, max_rows))
    while h % t:
        t -= 1
    return t


# --------------------------------------------------------------------------
# ConvTranspose2d(kernel=2, stride=2) + bias.
# out[b, 2h+di, 2w+dj, co] = sum_ci x[b, h, w, ci] * W[di, dj, ci, co] + bias[co]
# The dj interleave is folded into the matmul (weight columns ordered
# [dj=0 | dj=1]); the row (di) interleave is folded into the output layout
# (B, H, 2, W, 2*Cout), which reshapes to (B, 2H, 2W, Cout) for free.
# --------------------------------------------------------------------------
def _make_upconv2x2_kernel(flatten):
    def kernel(x_ref, w_ref, b_ref, o_ref):
        # x_ref: (1, TH, W, Cin)  w_ref: (2, Cin, 2*Cout)  b_ref: (1, 2*Cout) f32
        # o_ref: (1, TH, 2, W, 2*Cout)
        _, TH, W, Cin = x_ref.shape
        two_cout = o_ref.shape[4]
        bias = b_ref[...]                                   # (1, 2*Cout), f32
        if flatten:
            x = x_ref[0].reshape(TH * W, Cin)               # lane-dim unchanged
        else:
            x = x_ref[0]                                    # (TH, W, Cin)
        for di in range(2):
            if flatten:
                z = jnp.dot(x, w_ref[di],
                            preferred_element_type=jnp.float32) + bias
                z = z.reshape(TH, W, two_cout)
            else:
                z = jax.lax.dot_general(
                    x, w_ref[di], (((2,), (0,)), ((), ())),
                    preferred_element_type=jnp.float32) + bias
            o_ref[0, :, di, :, :] = z.astype(o_ref.dtype)
    return kernel


def upconv2x2(x, w, b, *, max_rows=32, compute_dtype=None):
    """ConvTranspose2d(k=2, s=2) + bias, NHWC.  w: (2,2,Cin,Cout), b: (Cout,)."""
    B, H, W, Cin = x.shape
    Cout = w.shape[-1]
    cd = jnp.dtype(compute_dtype) if compute_dtype is not None else x.dtype
    TH = _row_tile(H, max_rows)
    n_tiles = H // TH
    flatten = (W % 8 == 0)

    # Fold the dj (column-phase) interleave into the matmul output axis.
    wcat = jnp.concatenate([w[:, 0], w[:, 1]], axis=-1).astype(cd)  # (2,Cin,2*Cout)
    bcat = jnp.concatenate([b, b]).reshape(1, 2 * Cout).astype(jnp.float32)
    xc = x.astype(cd)

    isz = jnp.dtype(cd).itemsize
    cost = pl.CostEstimate(
        flops=int(2 * B * H * W * Cin * 4 * Cout),
        transcendentals=0,
        bytes_accessed=int(xc.size * isz + wcat.size * isz + bcat.size * 4
                           + B * H * W * 4 * Cout * isz))

    out5 = pl.pallas_call(
        _make_upconv2x2_kernel(flatten),
        out_shape=jax.ShapeDtypeStruct((B, H, 2, W, 2 * Cout), cd),
        grid=(B, n_tiles),
        in_specs=[
            pl.BlockSpec((1, TH, W, Cin), lambda bb, i: (bb, i, 0, 0)),
            pl.BlockSpec((2, Cin, 2 * Cout), lambda bb, i: (0, 0, 0)),
            pl.BlockSpec((1, 2 * Cout), lambda bb, i: (0, 0)),
        ],
        out_specs=pl.BlockSpec((1, TH, 2, W, 2 * Cout),
                               lambda bb, i: (bb, i, 0, 0, 0)),
        compiler_params=pltpu.CompilerParams(
            dimension_semantics=("parallel", "parallel"),
            vmem_limit_bytes=_VMEM_LIMIT),
        cost_estimate=cost,
    )(xc, wcat, bcat)
    # Free row-major reshape: (B, H, 2, W, 2*Cout) -> (B, 2H, 2W, Cout).
    return out5.reshape(B, 2 * H, 2 * W, Cout)


# --------------------------------------------------------------------------
# 3x3 conv, padding=1, no bias, fused ReLU; accepts a *list* of inputs whose
# channels are virtually concatenated (fuses the skip-connection concat).
# Row-tiled with 1-row halos; zero padding staged in a VMEM scratch.
# --------------------------------------------------------------------------
def _make_conv3x3_relu_kernel(n_in, flatten):
    def kernel(*refs):
        o_ref = refs[4 * n_in]
        xp_refs = refs[4 * n_in + 1:]
        i = pl.program_id(1)
        n_i = pl.num_programs(1)
        _, TH, W, Cout = o_ref.shape

        if flatten:
            acc = jnp.zeros((TH * W, Cout), jnp.float32)
        else:
            acc = jnp.zeros((TH, W, Cout), jnp.float32)

        for j in range(n_in):
            x_ref, top_ref, bot_ref, w_ref = refs[4 * j:4 * j + 4]
            xp = xp_refs[j]                                  # (TH+2, W+2, C)
            C = x_ref.shape[3]
            dt = x_ref.dtype

            # Stage a zero-padded (TH+2, W+2, C) window in VMEM: interior from
            # the row-tile block, halo rows from the 1-row neighbour blocks
            # (zeroed at the image borders), zero left/right padding columns.
            xp[:, 0:1, :] = jnp.zeros((TH + 2, 1, C), dt)
            xp[:, W + 1:W + 2, :] = jnp.zeros((TH + 2, 1, C), dt)
            xp[1:TH + 1, 1:W + 1, :] = x_ref[0]

            @pl.when(i == 0)
            def _():
                xp[0:1, 1:W + 1, :] = jnp.zeros((1, W, C), dt)

            @pl.when(i > 0)
            def _():
                xp[0:1, 1:W + 1, :] = top_ref[0]

            @pl.when(i == n_i - 1)
            def _():
                xp[TH + 1:TH + 2, 1:W + 1, :] = jnp.zeros((1, W, C), dt)

            @pl.when(i < n_i - 1)
            def _():
                xp[TH + 1:TH + 2, 1:W + 1, :] = bot_ref[0]

            # 9 shifted channel-contraction matmuls on the MXU (f32 accumulate).
            # TODO(synk): the dw>0 slices cross sublane tile boundaries; a
            # pltpu.roll-based shift (XLU) would avoid the relayout copies.
            for dh in range(3):
                for dw in range(3):
                    patch = xp[dh:dh + TH, dw:dw + W, :]
                    wk = w_ref[dh * 3 + dw]
                    if flatten:
                        acc = acc + jnp.dot(patch.reshape(TH * W, C), wk,
                                            preferred_element_type=jnp.float32)
                    else:
                        acc = acc + jax.lax.dot_general(
                            patch, wk, (((2,), (0,)), ((), ())),
                            preferred_element_type=jnp.float32)

        y = jnp.maximum(acc, 0.0)
        if flatten:
            y = y.reshape(TH, W, Cout)
        o_ref[0] = y.astype(o_ref.dtype)
    return kernel


def conv3x3_relu(inputs, weights, *, max_rows=32, compute_dtype=None):
    """3x3 conv (pad=1, no bias) + ReLU over virtually-concatenated inputs.

    inputs:  list of NHWC tensors (B, H, W, Cj)
    weights: list of (3, 3, Cj, Cout) slices of the full conv weight.
    """
    B, H, W, _ = inputs[0].shape
    Cout = weights[0].shape[-1]
    cd = (jnp.dtype(compute_dtype) if compute_dtype is not None
          else inputs[0].dtype)
    TH = _row_tile(H, max_rows)
    n_tiles = H // TH
    n_in = len(inputs)
    flatten = (W % 8 == 0)
    isz = jnp.dtype(cd).itemsize

    in_specs, args, scratch = [], [], []
    flops = 0
    bytes_acc = B * H * W * Cout * isz
    for xin, w in zip(inputs, weights):
        C = xin.shape[-1]
        xc = xin.astype(cd)
        wr = w.reshape(9, C, Cout).astype(cd)
        in_specs += [
            # current row tile + two 1-row halos (clamped at borders; the
            # kernel zeroes them there); all auto-pipelined by Pallas.
            pl.BlockSpec((1, TH, W, C), lambda bb, i: (bb, i, 0, 0)),
            pl.BlockSpec((1, 1, W, C),
                         lambda bb, i: (bb, jnp.maximum(i * TH - 1, 0), 0, 0)),
            pl.BlockSpec((1, 1, W, C),
                         lambda bb, i: (bb, jnp.minimum(i * TH + TH, H - 1), 0, 0)),
            pl.BlockSpec((9, C, Cout), lambda bb, i: (0, 0, 0)),
        ]
        args += [xc, xc, xc, wr]
        scratch.append(pltpu.VMEM((TH + 2, W + 2, C), cd))
        flops += 2 * 9 * B * H * W * C * Cout
        bytes_acc += xc.size * isz + wr.size * isz

    cost = pl.CostEstimate(flops=int(flops), transcendentals=0,
                           bytes_accessed=int(bytes_acc))

    return pl.pallas_call(
        _make_conv3x3_relu_kernel(n_in, flatten),
        out_shape=jax.ShapeDtypeStruct((B, H, W, Cout), cd),
        grid=(B, n_tiles),
        in_specs=in_specs,
        out_specs=pl.BlockSpec((1, TH, W, Cout), lambda bb, i: (bb, i, 0, 0)),
        scratch_shapes=scratch,
        compiler_params=pltpu.CompilerParams(
            dimension_semantics=("parallel", "parallel"),
            vmem_limit_bytes=_VMEM_LIMIT),
        cost_estimate=cost,
    )(*args)


# --------------------------------------------------------------------------
# Decoder forward (matches the PyTorch module, NHWC layout).
# --------------------------------------------------------------------------
def decoder_forward(x, encoder_features, params, *, max_rows=32,
                    compute_dtype=None):
    n_levels = len(params["up_w"])
    for i in range(n_levels):
        u = upconv2x2(x, params["up_w"][i], params["up_b"][i],
                      max_rows=max_rows, compute_dtype=compute_dtype)
        enc = encoder_features[i]
        # Center-crop (static slice; only when spatial sizes mismatch).
        if u.shape[1:3] != enc.shape[1:3]:
            th, tw = u.shape[1], u.shape[2]
            hs = (enc.shape[1] - th) // 2
            ws = (enc.shape[2] - tw) // 2
            enc = enc[:, hs:hs + th, ws:ws + tw, :]
        # torch.cat([x, enc], dim=1) is fused into conv1 by splitting its
        # weight along the input-channel axis (upconv channels first).
        w1 = params["c1_w"][i]
        cu = u.shape[-1]
        x = conv3x3_relu([u, enc], [w1[:, :, :cu, :], w1[:, :, cu:, :]],
                         max_rows=max_rows, compute_dtype=compute_dtype)
        x = conv3x3_relu([x], [params["c2_w"][i]],
                         max_rows=max_rows, compute_dtype=compute_dtype)
    return x


# --------------------------------------------------------------------------
# Pure-jnp reference (same math, no Pallas) for a sanity check.
# --------------------------------------------------------------------------
def _ref_upconv(x, w, b):
    B, H, W, Cin = x.shape
    Cout = w.shape[-1]
    y = jnp.einsum("bhwc,ijcd->bhiwjd", x, w).reshape(B, 2 * H, 2 * W, Cout)
    return y + b


def _ref_conv3x3_relu(x, w):
    B, H, W, Cin = x.shape
    Cout = w.shape[-1]
    xp = jnp.pad(x, ((0, 0), (1, 1), (1, 1), (0, 0)))
    out = jnp.zeros((B, H, W, Cout), jnp.float32)
    for dh in range(3):
        for dw in range(3):
            out = out + jnp.einsum("bhwc,cd->bhwd",
                                   xp[:, dh:dh + H, dw:dw + W, :], w[dh, dw])
    return jnp.maximum(out, 0.0)


def _ref_decoder(x, encoder_features, params):
    for i in range(len(params["up_w"])):
        x = _ref_upconv(x, params["up_w"][i], params["up_b"][i])
        enc = encoder_features[i]
        if x.shape[1:3] != enc.shape[1:3]:
            th, tw = x.shape[1], x.shape[2]
            hs = (enc.shape[1] - th) // 2
            ws = (enc.shape[2] - tw) // 2
            enc = enc[:, hs:hs + th, ws:ws + tw, :]
        x = jnp.concatenate([x, enc], axis=-1)
        x = _ref_conv3x3_relu(x, params["c1_w"][i])
        x = _ref_conv3x3_relu(x, params["c2_w"][i])
    return x


# --------------------------------------------------------------------------
# Deterministic parameter init + example run.
# --------------------------------------------------------------------------
def init_params(key, chs):
    up_w, up_b, c1_w, c2_w = [], [], [], []
    for i in range(len(chs) - 1):
        key, k1, k2, k3, k4 = jax.random.split(key, 5)
        cin, cout = chs[i], chs[i + 1]
        up_w.append(0.1 * jax.random.normal(k1, (2, 2, cin, cout), jnp.float32))
        up_b.append(0.1 * jax.random.normal(k2, (cout,), jnp.float32))
        c1_w.append(0.1 * jax.random.normal(k3, (3, 3, 2 * cout, cout), jnp.float32))
        c2_w.append(0.1 * jax.random.normal(k4, (3, 3, cout, cout), jnp.float32))
    return {"up_w": up_w, "up_b": up_b, "c1_w": c1_w, "c2_w": c2_w}


if __name__ == "__main__":
    # Small version of Decoder(chs=(512,256,128,64)) -> chs=(32,16,8,4)
    chs = (32, 16, 8, 4)
    key = jax.random.PRNGKey(0)
    key, kp, kx, ke0, ke1, ke2 = jax.random.split(key, 6)

    params = init_params(kp, chs)

    B = 2
    x = jax.random.normal(kx, (B, 4, 4, chs[0]), jnp.float32)           # NHWC
    encoder_features = [
        jax.random.normal(ke0, (B, 8, 8, chs[1]), jnp.float32),         # exact match
        jax.random.normal(ke1, (B, 17, 17, chs[2]), jnp.float32),       # exercises crop
        jax.random.normal(ke2, (B, 32, 32, chs[3]), jnp.float32),       # exact match
    ]

    # max_rows=8 so the toy shapes exercise multi-row-tile grids + halo logic.
    out = decoder_forward(x, encoder_features, params, max_rows=8)
    out = jax.block_until_ready(out)

    ref = _ref_decoder(x, encoder_features, params)
    assert out.shape == (B, 32, 32, chs[-1]), out.shape
    assert jnp.allclose(out, ref, rtol=1e-4, atol=1e-4), "mismatch vs reference"

    # bf16 MXU path (v6e/v7x): same kernels, f32 accumulation, loose tolerance.
    out_bf = decoder_forward(x, encoder_features, params, max_rows=8,
                             compute_dtype=jnp.bfloat16)
    out_bf = jax.block_until_ready(out_bf)
    rel = (jnp.mean(jnp.abs(out_bf.astype(jnp.float32) - ref))
           / (jnp.mean(jnp.abs(ref)) + 1e-8))
    assert out_bf.shape == out.shape and float(rel) < 0.08, float(rel)

    print("KERNEL_OK")
</pallas_src>

<mosaic_0001>
module attributes {stable_mosaic.version = 11 : i64} {
  func.func @kernel(%arg0: i32, %arg1: i32, %arg2: memref<1x4x4x32xf32, #tpu.memory_space<vmem>>, %arg3: memref<2x32x32xf32, #tpu.memory_space<vmem>>, %arg4: memref<1x32xf32, #tpu.memory_space<vmem>>, %arg5: memref<1x4x2x4x32xf32, #tpu.memory_space<vmem>>) attributes {dimension_semantics = [#tpu.dimension_semantics<parallel>, #tpu.dimension_semantics<parallel>], iteration_bounds = array<i64: 2, 1>, scalar_prefetch = 0 : i64, scratch_operands = 0 : i64, tpu.core_type = #tpu.core_type<tc>, window_params = [{transform_indices = @transform_0, window_bounds = array<i64: 1, 4, 4, 32>}, {pipeline_mode = #tpu.pipeline_mode<synchronous>, transform_indices = @transform_1, window_bounds = array<i64: 2, 32, 32>}, {pipeline_mode = #tpu.pipeline_mode<synchronous>, transform_indices = @transform_2, window_bounds = array<i64: 1, 32>}, {transform_indices = @transform_3, window_bounds = array<i64: 1, 4, 2, 4, 32>}]} {
    %c0 = arith.constant 0 : index
    %c0_0 = arith.constant 0 : index
    %0 = vector.load %arg4[%c0, %c0_0] : memref<1x32xf32, #tpu.memory_space<vmem>>, vector<1x32xf32>
    %c0_1 = arith.constant 0 : index
    %c0_2 = arith.constant 0 : index
    %c0_3 = arith.constant 0 : index
    %c0_4 = arith.constant 0 : index
    %1 = vector.load %arg2[%c0_1, %c0_2, %c0_3, %c0_4] : memref<1x4x4x32xf32, #tpu.memory_space<vmem>>, vector<1x4x4x32xf32>
    %2 = vector.shape_cast %1 : vector<1x4x4x32xf32> to vector<4x4x32xf32>
    %c0_5 = arith.constant 0 : index
    %c0_6 = arith.constant 0 : index
    %c0_7 = arith.constant 0 : index
    %3 = vector.load %arg3[%c0_5, %c0_6, %c0_7] : memref<2x32x32xf32, #tpu.memory_space<vmem>>, vector<1x32x32xf32>
    %4 = vector.shape_cast %3 : vector<1x32x32xf32> to vector<32x32xf32>
    %cst = arith.constant dense<0.000000e+00> : vector<4x4x32xf32>
    %5 = tpu.matmul %2, %4, %cst {dimension_numbers = #tpu.dot_dimension_numbers<[2], [0], [0, 1], [1], [0, 0, 0, 1, 1, 1], [], []>} : vector<4x4x32xf32>, vector<32x32xf32>, vector<4x4x32xf32> -> vector<4x4x32xf32>
    %6 = vector.shape_cast %0 : vector<1x32xf32> to vector<1x1x32xf32>
    %7 = vector.broadcast %6 : vector<1x1x32xf32> to vector<4x4x32xf32>
    %8 = arith.addf %5, %7 : vector<4x4x32xf32>
    %c0_8 = arith.constant 0 : index
    %c0_9 = arith.constant 0 : index
    %c0_10 = arith.constant 0 : index
    %c0_11 = arith.constant 0 : index
    %c0_12 = arith.constant 0 : index
    %9 = vector.load %arg5[%c0_8, %c0_9, %c0_10, %c0_11, %c0_12] : memref<1x4x2x4x32xf32, #tpu.memory_space<vmem>>, vector<1x4x1x4x32xf32>
    %10 = vector.shape_cast %9 : vector<1x4x1x4x32xf32> to vector<4x4x32xf32>
    %11 = vector.shape_cast %8 : vector<4x4x32xf32> to vector<1x4x1x4x32xf32>
    tpu.vector_store %arg5[%c0_8, %c0_9, %c0_10, %c0_11, %c0_12], %11 {strides = array<i32>} : memref<1x4x2x4x32xf32, #tpu.memory_space<vmem>>, vector<1x4x1x4x32xf32>,
    %c1 = arith.constant 1 : index
    %c0_13 = arith.constant 0 : index
    %c0_14 = arith.constant 0 : index
    %12 = vector.load %arg3[%c1, %c0_13, %c0_14] : memref<2x32x32xf32, #tpu.memory_space<vmem>>, vector<1x32x32xf32>
    %13 = vector.shape_cast %12 : vector<1x32x32xf32> to vector<32x32xf32>
    %cst_15 = arith.constant dense<0.000000e+00> : vector<4x4x32xf32>
    %14 = tpu.matmul %2, %13, %cst_15 {dimension_numbers = #tpu.dot_dimension_numbers<[2], [0], [0, 1], [1], [0, 0, 0, 1, 1, 1], [], []>} : vector<4x4x32xf32>, vector<32x32xf32>, vector<4x4x32xf32> -> vector<4x4x32xf32>
    %15 = vector.shape_cast %0 : vector<1x32xf32> to vector<1x1x32xf32>
    %16 = vector.broadcast %15 : vector<1x1x32xf32> to vector<4x4x32xf32>
    %17 = arith.addf %14, %16 : vector<4x4x32xf32>
    %c0_16 = arith.constant 0 : index
    %c0_17 = arith.constant 0 : index
    %c1_18 = arith.constant 1 : index
    %c0_19 = arith.constant 0 : index
    %c0_20 = arith.constant 0 : index
    %18 = vector.load %arg5[%c0_16, %c0_17, %c1_18, %c0_19, %c0_20] : memref<1x4x2x4x32xf32, #tpu.memory_space<vmem>>, vector<1x4x1x4x32xf32>
    %19 = vector.shape_cast %18 : vector<1x4x1x4x32xf32> to vector<4x4x32xf32>
    %20 = vector.shape_cast %17 : vector<4x4x32xf32> to vector<1x4x1x4x32xf32>
    tpu.vector_store %arg5[%c0_16, %c0_17, %c1_18, %c0_19, %c0_20], %20 {strides = array<i32>} : memref<1x4x2x4x32xf32, #tpu.memory_space<vmem>>, vector<1x4x1x4x32xf32>,
    return
  }
  func.func @transform_0(%arg0: i32, %arg1: i32) -> (i32, i32, i32, i32) {
    %c0_i32 = arith.constant 0 : i32
    %c0_i32_0 = arith.constant 0 : i32
    %c0_i32_1 = arith.constant 0 : i32
    return %arg0, %arg1, %c0_i32, %c0_i32_0 : i32, i32, i32, i32
  }
  func.func @transform_1(%arg0: i32, %arg1: i32) -> (i32, i32, i32) {
    %c0_i32 = arith.constant 0 : i32
    %c0_i32_0 = arith.constant 0 : i32
    %c0_i32_1 = arith.constant 0 : i32
    %c0_i32_2 = arith.constant 0 : i32
    return %c0_i32, %c0_i32_0, %c0_i32_1 : i32, i32, i32
  }
  func.func @transform_2(%arg0: i32, %arg1: i32) -> (i32, i32) {
    %c0_i32 = arith.constant 0 : i32
    %c0_i32_0 = arith.constant 0 : i32
    %c0_i32_1 = arith.constant 0 : i32
    return %c0_i32, %c0_i32_0 : i32, i32
  }
  func.func @transform_3(%arg0: i32, %arg1: i32) -> (i32, i32, i32, i32, i32) {
    %c0_i32 = arith.constant 0 : i32
    %c0_i32_0 = arith.constant 0 : i32
    %c0_i32_1 = arith.constant 0 : i32
    %c0_i32_2 = arith.constant 0 : i32
    return %arg0, %arg1, %c0_i32, %c0_i32_0, %c0_i32_1 : i32, i32, i32, i32, i32
  }
}

</mosaic_0001>

<bundles_post_ra>
// kernel: tpu_custom_call.1
= control target key start
LH: loop header
LB: loop body
LE: loop exit
PB: predicated region body
PF: predicated region fallthrough
CT: control target
= control target key end

     0   :  { %8 = vsyncpa [#allocation3], 0  ;;  %s1047_s0 = inlined_call_operand.hbm [shape: f32[2,4,4,32], index: 0, kind: input, shape index: {}]   ;;  %s1048_s1 = inlined_call_operand.hbm [shape: f32[2,32,32], index: 1, kind: input, shape index: {}]   ;;  %s1049_s2 = inlined_call_operand.vmem [shape: f32[1,32], index: 2, kind: input, shape index: {}]   ;;  %s1050_s3 = inlined_call_operand.hbm [shape: f32[2,4,2,4,32], index: 3, kind: output, shape index: {}]  }
   0x1   :  { %10 = vsyncpa [#allocation3 + $0x1], 0 }
   0x2   :  { %11 = vsyncpa [#allocation6], 0 }
   0x3   :  { %12 = vsyncpa [#allocation4], 0 }
   0x4   :  { %14 = vsyncpa [#allocation4 + $0x1], 0  ;;  %s854_s12 = smov 0   ;;  %s856_s13 = smov 0  }
   0x5   :  { %s858_s14 = smov 0   ;;  %s860_s15 = smov 0  }
   0x6   :  { %s862_s16 = smov 0   ;;  %s864_s17 = smov 0  }
   0x7 LB: > { %s542_s18 = sadd.s32 4294967295, %s823_s17   ;;  %s543_s19 = sadd.s32 4294967294, %s823_s17   ;;  %s823_s17 = sphi %s864_s17, %s20_s17   ;;  %s819_s16 = sphi %s862_s16, %s1068_s16   ;;  %s815_s15 = sphi %s860_s15, %s1067_s15   ;;  %s811_s14 = sphi %s858_s14, %s1066_s14   ;;  %s807_s13 = sphi %s856_s13, %s1065_s13   ;;  %s803_s12 = sphi %s854_s12, %s1064_s12  }
   0x8   : > { %p54_p0 = scmp.ne.s32.totalorder %s807_s13, %s803_s12  ;;  %p888_p1 = scmp.eq.s32.totalorder %s542_s18, 0 }
   0x9   : > { %p892_p2 = scmp.eq.s32.totalorder %s542_s18, 1  ;;  %p128_p3 = scmp.eq.s32.totalorder %s543_s19, 1 }
   0xa   : > { %p898_p4 = por %p888_p1, %p54_p0  ;;  %p544_p5 = scmp.ge.s32.totalorder %s823_s17, 1 }
   0xb   : > { %p903_p6 = por %p128_p3, %p54_p0  ;;  %p135_p7 = scmp.lt.s32.totalorder %s823_s17, 3 }
   0xc   : > { %s1054_s22 = scalar_select %p898_p4, 1, 0 }
   0xd   : > { %s1055_s23 = scalar_select %p903_p6, 1, 0 }
   0xe   : > { %p908_p8 = pnand %p544_p5, %p135_p7  ;;  %s825_s25 = smov [#allocation5]  }
   0xf   : > { %s147_s26 = sshll.u32 %s825_s25, 4  ;;  %s32_s28 = sadd.s32 1, %s819_s16  ;;  %s148_s26 = int_to_ptr.vmem [resolvable:$true] %s147_s26 }
  0x10   : > { %p612_p9 = pneg %p908_p8  ;;  %s696_s29 = scalar_lea.vmem %s148_s26, 1024 }
  0x11   : > { %p697_p13 = scmp.ne.s32.totalorder %s148_s26, %s696_s29  ;;  %p704_p5 = scmp.lt.s32.totalorder %s148_s26, %s148_s26 }
  0x12   : > { %p917_p11 = pnand %p612_p9, %p888_p1  ;;  %p705_p7 = scmp.lt.s32.totalorder %s696_s29, %s696_s29 }
  0x14   : > { %p687_p12 = pneg %p917_p11  ;;  %p706_p6 = por %p705_p7, %p704_p5 }
  0x16   : > { %p699_p0 = pnand %p697_p13, %p687_p12 }
  0x18   : > { %p700_p3 = pneg %p699_p0 }
  0x1a   : > { %p707_p4 = pnand %p706_p6, %p700_p3 }
  0x1c   : > { %710 = shalt.err (!%p707_p4)
}
  0x1d   : > { %s826_s30 = smov 128   ;;  %s827_s4 = smov 8  }
  0x1e   : > { %615 = dma.hbm_to_vmem [thread:$0]  (!%p917_p11), %s1048_s1, 1024, %s148_s26, [#allocation6], %s826_s30, %s826_s30, %s827_s4  }
  0x1f   : > { %p34_p6 = scmp.ge.s32.totalorder %s32_s28, 2  ;;  %s41_s7 = sadd.s32 1, %s811_s14 }
  0x20   : > { %p48_p4 = scmp.ne.s32.totalorder %s811_s14, %s807_s13  ;;  %p49_p9 = scmp.eq.s32.totalorder %s823_s17, 0 }
  0x21   : > { %s1070_s28 = smov (%p34_p6, %s32_s28), 0  ;;  %p625_p0 = scmp.lt.s32.totalorder %s823_s17, 2 }
  0x22   : > { %p935_p12 = por %p49_p9, %p48_p4  ;;  %p941_p13 = por %p892_p2, %p48_p4 }
  0x23   : > { %s36_s10 = ssub.s32 %s819_s16, %s1070_s28  ;;  %s164_s11 = sand.u32 1, %s811_s14  }
  0x24   : > { %p39_p11 = scmp.eq.s32.totalorder %s36_s10, 0  ;;  %s547_s18 = sshll.u32 %s164_s11, 4 }
  0x25   : > { %s568_s25 = sshll.u32 %s819_s16, 8  ;;  %s168_s30 = scalar_lea.vmem [#allocation2], %s547_s18 }
  0x26   : > { %s950_s19 = scalar_select %p39_p11, %s811_s14, %s41_s7  }
  0x27   : > { %s176_s29 = scalar_lea.hbm %s1047_s0, %s568_s25  ;;  %s177_s4 = sshll.u32 %s168_s30, 4  ;;  %s178_s4 = int_to_ptr.vmem [resolvable:$true] %s177_s4 }
  0x28   : > { %p958_p2 = pnand %p625_p0, %p935_p12  ;;  %s165_s5 = scalar_lea.sflag [#allocation3], %s164_s11 }
  0x29   : > { %s724_s6 = scalar_lea.vmem %s178_s4, 256  ;;  %s828_s7 = smov [#allocation2]  }
  0x2a   : > { %p713_p3 = pneg %p958_p2  ;;  %p725_p5 = scmp.ne.s32.totalorder %s178_s4, %s724_s6 }
  0x2b   : > { %s729_s10 = sshll.u32 %s828_s7, 4  ;;  %s730_s10 = int_to_ptr.vmem [resolvable:$false] %s729_s10 }
  0x2c   : > { %p727_p7 = pnand %p725_p5, %p713_p3  ;;  %s731_s25 = scalar_lea.vmem %s730_s10, 512 }
  0x2d   : > { %p732_p4 = scmp.lt.s32.totalorder %s178_s4, %s730_s10  ;;  %p733_p9 = scmp.lt.s32.totalorder %s731_s25, %s724_s6 }
  0x2e   : > { %p728_p6 = pneg %p727_p7 }
  0x2f   : > { %p734_p11 = por %p733_p9, %p732_p4 }
  0x31   : > { %p735_p10 = pnand %p734_p11, %p728_p6 }
  0x33   : > { %738 = shalt.err (!%p735_p10)
}
  0x34   : > { %s829_s8 = smov 64   ;;  %s830_s18 = smov 4  }
  0x35   : > { %619 = dma.hbm_to_vmem [thread:$0]  (!%p958_p2), %s176_s29, 256, %s178_s4, %s165_s5, %s829_s8, %s829_s8, %s830_s18  }
  0x36   : > { %189 = sbr.rel (%p908_p8) target bundleno = 286 (0x11e), region = 32  ;;  %s969_s11 = sand.u32 (!%p908_p8), 1, %s807_s13  }
  0x37   : > { %s551_s26 = sshll.u32 (!%p908_p8), %s969_s11, 4  ;;  %s192_s27 = scalar_lea.sflag (!%p908_p8), [#allocation3], %s969_s11 }
  0x38   : > { %s195_s30 = scalar_lea.vmem (!%p908_p8), [#allocation2], %s551_s26  ;;  %p1061_p12 = scmp.ne.s32.totalorder (!%p908_p8), %s1054_s22, 0 }
  0x3b   : > { %790 = dma.done.wait (%p1061_p12), %s192_s27, 256  }
  0x3c   : > { %792 = vsyncadd (%p1061_p12), %s192_s27, 4294967040 }
  0x3d   : > { %794 = dma.done.wait (%p888_p1), [#allocation6], 1024  }
  0x3e   : > { %796 = vsyncadd (%p888_p1), [#allocation6], 4294966272  ;;  %v232_v0 = vld [vmem:[#allocation5 + $0x18] sm:$0xff]  ;;  %v231_v2 = vld [vmem:[#allocation5 + $0x10] sm:$0xff]  ;;  %vm246_vm0 = vcmask 261120   ;;  %s553_s24 = sshll.u32 %s969_s11, 5 }
  0x3f   : > { %v341_v1 = vld [vmem:[#allocation5 + $0x38] sm:$0xff]  ;;  %582 = vmatprep.subr.mxu0 %v232_v0  ;;  %v340_v3 = vld [vmem:[#allocation5 + $0x30] sm:$0xff]  ;;  %v230_v4 = vld [vmem:[#allocation5 + $0x8] sm:$0xff]  ;;  %vm332_vm1 = vcmask 257024   ;;  %s569_s29 = sshll.u32 %s815_s15, 9  ;;  %s221_s4 = scalar_lea.vmem [#allocation7], %s553_s24 }
  0x40   : > { %593 = vmatprep.subr.mxu1 %v341_v1  ;;  %583 = vmatpush3.msra.mxu0 %v232_v0  ;;  %v339_v5 = vld [vmem:[#allocation5 + $0x28] sm:$0xff]  ;;  %v229_v6 = vld [vmem:[#allocation5] sm:$0xff]  ;;  %s445_s21 = sshll.u32 %s221_s4, 4  ;;  %s991_s7 = scalar_lea.hbm %s1050_s3, %s569_s29  ;;  %s993_s21 = int_to_ptr.vmem [resolvable:$true] %s445_s21 }
  0x41   : > { %594 = vmatpush3.msra.mxu1 %v341_v1  ;;  %584 = vmatprep.subr.mxu0 %v231_v2  ;;  %v338_v7 = vld [vmem:[#allocation5 + $0x20] sm:$0xff]  ;;  %v684_v9 = vld [vmem:[%s195_s30 + $0x8] sm:$0xff]   ;;  %s429_s15 = scalar_lea.sflag [#allocation4], %s969_s11  ;;  %s739_s10 = scalar_lea.vmem %s993_s21, 512 }
  0x42   : > { %595 = vmatprep.subr.mxu1 %v340_v3  ;;  %585 = vmatpush3.msra.mxu0 %v231_v2  ;;  %v683_v8 = vld [vmem:[%s195_s30] sm:$0xff]   ;;  %p740_p1 = scmp.ne.s32.totalorder %s993_s21, %s739_s10  ;;  %s831_s25 = smov [#allocation7]  }
  0x43   : > { %596 = vmatpush3.msra.mxu1 %v340_v3  ;;  %586 = vmatprep.subr.mxu0 %v230_v4  ;;  %v554_v10 = vld [vmem:[%s1049_s2] ss:$0 sm:$0xff]  ;;  %s743_s8 = sshll.u32 %s831_s25, 4  ;;  %s744_s8 = int_to_ptr.vmem [resolvable:$false] %s743_s8 }
  0x44   : > { %597 = vmatprep.subr.mxu1 %v339_v5  ;;  %587 = vmatpush3.msra.mxu0 %v230_v4  ;;  %v244_v11 = vcombine.low %v554_v10, %v554_v10  ;;  %p741_p8 = pnand %p740_p1, %p941_p13  ;;  %s745_s18 = scalar_lea.vmem %s744_s8, 1024 }
  0x45   : > { %598 = vmatpush3.msra.mxu1 %v339_v5  ;;  %588 = vmatprep.subr.mxu0 %v229_v6  ;;  %p746_p0 = scmp.lt.s32.totalorder %s993_s21, %s744_s8  ;;  %p747_p2 = scmp.lt.s32.totalorder %s745_s18, %s739_s10 }
  0x46   : > { %599 = vmatprep.subr.mxu1 %v338_v7  ;;  %589 = vmatpush3.msra.mxu0 %v229_v6  ;;  %p742_p10 = pneg %p741_p8 }
  0x47   : > { %590 = vmatprep.mubr.msk.f32.mxu0 %vm246_vm0, %v683_v8  ;;  %600 = vmatpush3.msra.mxu1 %v338_v7  ;;  %p748_p3 = por %p747_p2, %p746_p0 }
  0x48   : > { %601 = vmatprep.mubr.msk.f32.mxu1 %vm246_vm0, %v683_v8  ;;  %591 = vmatmul.mubr.msk.f32.vlgmr.msra.gmra.mxu0 %vm246_vm0, %v684_v9 }
  0x49   : > { %602 = vmatmul.mubr.msk.f32.vlgmr.msra.gmra.mxu1 %vm246_vm0, %v684_v9  ;;  %p749_p5 = pnand %p748_p3, %p742_p10 }
 0x108   : > { %v592_v12 = vpop.f32.mrf.mxu0 }
 0x109   : > { %v603_v13 = vpop.f32.mrf.mxu1  ;;  %v323_v14 = vadd.f32 %v592_v12, %v244_v11 }
 0x10a   : > { %v414_v15 = vadd.f32 %v603_v13, %v244_v11  ;;  %v317_v16 = vpop.f32.mrf.mxu0 }
 0x10b   : > { %v408_v17 = vpop.f32.mrf.mxu1  ;;  %v329_v18 = vcombine.high %v323_v14, %v323_v14  ;;  %335 = vst.msk [vmem:[%s221_s4 + $0x10] sm:$0xf] %vm332_vm1, %v323_v14  ;;  %v318_v20 = vadd.f32 %v317_v16, %v244_v11 }
 0x10c   : > { %v420_v19 = vcombine.high %v414_v15, %v414_v15  ;;  %561 = vst.msk [vmem:[%s221_s4 + $0x14] sm:$0xf] %vm332_vm1, %v414_v15  ;;  %v409_v21 = vadd.f32 %v408_v17, %v244_v11 }
 0x10d   : > { %336 = vst.msk [vmem:[%s221_s4 + $0x18] sm:$0xf] %vm332_vm1, %v329_v18  ;;  %v328_v22 = vcombine.high %v318_v20, %v318_v20  ;;  %333 = vst.msk [vmem:[%s221_s4] sm:$0xf] %vm332_vm1, %v318_v20 }
 0x10e   : > { %562 = vst.msk [vmem:[%s221_s4 + $0x1c] sm:$0xf] %vm332_vm1, %v420_v19  ;;  %v419_v23 = vcombine.high %v409_v21, %v409_v21  ;;  %559 = vst.msk [vmem:[%s221_s4 + $0x4] sm:$0xf] %vm332_vm1, %v409_v21 }
 0x10f   : > { %334 = vst.msk [vmem:[%s221_s4 + $0x8] sm:$0xf] %vm332_vm1, %v328_v22 }
 0x110   : > { %560 = vst.msk [vmem:[%s221_s4 + $0xc] sm:$0xf] %vm332_vm1, %v419_v23 }
 0x111   : > { %752 = shalt.err (!%p749_p5)
}
 0x112   : > { %s753_s26 = scalar_lea.hbm %s991_s7, 512  ;;  %s757_s20 = scalar_lea.hbm %s1050_s3, 1024 }
 0x113   : > { %p754_p7 = scmp.ne.s32.totalorder %s991_s7, %s753_s26  ;;  %p758_p9 = scmp.lt.s32.totalorder %s991_s7, %s1050_s3 }
 0x114   : > { %p759_p11 = scmp.lt.s32.totalorder %s757_s20, %s753_s26 }
 0x115   : > { %p755_p6 = pnand %p754_p7, %p941_p13 }
 0x116   : > { %p760_p12 = por %p759_p11, %p758_p9 }
 0x117   : > { %p756_p4 = pneg %p755_p6 }
 0x119   : > { %p761_p1 = pnand %p760_p12, %p756_p4 }
 0x11b   : > { %764 = shalt.err (!%p761_p1)
}
 0x11c   : > { %s832_s29 = smov 64   ;;  %s833_s4 = smov 4  }
 0x11d   : > { %610 = dma.vmem_to_hbm [thread:$0]  (%p941_p13), %s993_s21, 512, %s991_s7, %s429_s15, %s832_s29, %s832_s29, %s833_s4  }
 0x11e PF: > { %s460_s5 = sand.u32 1, %s803_s12   ;;  %p1062_p8 = scmp.ne.s32.totalorder %s1055_s23, 0 }
 0x11f   : > { %p1063_p10 = scmp.ge.s32.totalorder %s823_s17, 2  ;;  %s461_s6 = scalar_lea.sflag [#allocation4], %s460_s5 }
 0x121   : > { %p621_p0 = pnand %p1063_p10, %p1062_p8 }
 0x123   : > { %p622_p2 = pneg %p621_p0 }
 0x125   : > { %798 = dma.done.wait (%p622_p2), %s461_s6, 512  }
 0x126   : > { %800 = vsyncadd (%p622_p2), %s461_s6, 4294966784  ;;  %s20_s17 = sadd.s32 1, %s823_s17   ;;  %s1064_s12 = smov %s807_s13 }
 0x127   : > { %p17_p3 = scmp.ge.s32.totalorder %s20_s17, 4   ;;  %s1065_s13 = smov %s811_s14 }
 0x128   : > { %s1066_s14 = smov %s950_s19  ;;  %s1067_s15 = smov %s819_s16 }
 0x129   : > { %s1068_s16 = smov %s1070_s28  ;;  %19 = sbr.rel (!%p17_p3) target bundleno = 7 (0x7), region = 83 }
 0x12e   :  { %466 = vsyncpa [#allocation3], 1 }
 0x12f   :  { %468 = vsyncpa [#allocation3 + $0x1], 1 }
 0x130   :  { %469 = vsyncpa [#allocation6], 1 }
 0x131   :  { %470 = vsyncpa [#allocation4], 1 }
 0x132   :  { %472 = vsyncpa [#allocation4 + $0x1], 1 }

</bundles_post_ra>
